<compile_context>
chip_gen: v5e
topology: v5e:2x2
jax: 0.10.0
libtpu: 0.0.40
codegen_flags: <defaults>
</compile_context>

<pallas_src>
import functools
import math

import jax
import jax.numpy as jnp
from jax.experimental import pallas as pl
from jax.experimental.pallas import tpu as pltpu

LANE = 128
VMEM_LIMIT = 48 * 1024 * 1024  # <= ~48 MiB keeps headroom on v7x (64 MiB physical)


# ----------------------------- kernel bodies ------------------------------

def transform_kernel(x_ref, w_ref, o_ref):
    """o = x @ W1 (row-block tiled; dropout already folded into x)."""
    o_ref[...] = jnp.dot(x_ref[...], w_ref[...],
                         preferred_element_type=jnp.float32).astype(o_ref.dtype)


def aggregate_w2_kernel(adj_ref, h_ref, b_ref, w2_ref, o_ref, acc_ref, *, tk):
    """o = relu(Â @ h + b1) @ W2, grid (row block i, contraction block k).

    h / b1 / W2 are constant-indexed (VMEM-resident across the whole grid);
    the k-th contraction stripe of h is sliced in-kernel with pl.ds.
    """
    k = pl.program_id(1)

    @pl.when(k == 0)
    def _():
        acc_ref[...] = jnp.zeros_like(acc_ref)

    off = pl.multiple_of(k * tk, tk)
    acc_ref[...] += jnp.dot(adj_ref[...], h_ref[pl.ds(off, tk), :],
                            preferred_element_type=jnp.float32)

    @pl.when(k == pl.num_programs(1) - 1)
    def _():
        h_act = jnp.maximum(acc_ref[...] + b_ref[...], 0.0).astype(jnp.bfloat16)
        o_ref[...] = jnp.dot(h_act, w2_ref[...],
                             preferred_element_type=jnp.float32).astype(o_ref.dtype)


def aggregate_fc_softmax_kernel(adj_ref, h_ref, b_ref, wfc_ref, bfc_ref, o_ref,
                                acc_ref, *, tk, num_classes):
    """o = softmax(relu(Â @ h + b2) @ Wfc + bfc); class axis padded to 128 lanes."""
    k = pl.program_id(1)

    @pl.when(k == 0)
    def _():
        acc_ref[...] = jnp.zeros_like(acc_ref)

    off = pl.multiple_of(k * tk, tk)
    acc_ref[...] += jnp.dot(adj_ref[...], h_ref[pl.ds(off, tk), :],
                            preferred_element_type=jnp.float32)

    @pl.when(k == pl.num_programs(1) - 1)
    def _():
        h_act = jnp.maximum(acc_ref[...] + b_ref[...], 0.0).astype(jnp.bfloat16)
        logits = jnp.dot(h_act, wfc_ref[...],
                         preferred_element_type=jnp.float32) + bfc_ref[...]
        lane = jax.lax.broadcasted_iota(jnp.int32, logits.shape, 1)
        logits = jnp.where(lane < num_classes, logits, -1e30)
        m = jnp.max(logits, axis=-1, keepdims=True)
        e = jnp.exp(logits - m)
        o_ref[...] = e / jnp.sum(e, axis=-1, keepdims=True)   # exact softmax


# ------------------------------- wrapper -----------------------------------

def gcn_forward(x, adj_norm, params, dropout_key, *, training=True, tm=256, tk=256):
    """Pallas GCN forward. Returns [num_nodes, num_classes] softmax probabilities."""
    n, f = x.shape
    emb = params["w1"].shape[1]
    num_classes = params["wfc"].shape[1]
    assert f % LANE == 0 and emb % LANE == 0, "feature dims must be lane-aligned"

    # Pad node dim so both tm (row tile) and tk (contraction tile) divide it.
    step = math.lcm(tm, tk)
    n_pad = pl.cdiv(n, step) * step

    # Dropout (p=0.5, training scaling) folded into the padded input here, so a
    # single (n_pad, f) bf16 stream enters the first kernel (no mask stream).
    if training:
        keep = jax.random.bernoulli(dropout_key, 0.5, (n, f))
        x_d = jnp.where(keep, x * 2.0, 0.0)
    else:
        x_d = x
    x_p = jnp.zeros((n_pad, f), jnp.bfloat16).at[:n].set(x_d.astype(jnp.bfloat16))

    adj_p = jnp.zeros((n_pad, n_pad), jnp.bfloat16).at[:n, :n].set(
        adj_norm.astype(jnp.bfloat16))

    w1 = params["w1"].astype(jnp.bfloat16)
    w2 = params["w2"].astype(jnp.bfloat16)
    b1 = params["b1"].astype(jnp.float32)
    b2 = params["b2"].astype(jnp.float32)
    wfc_p = jnp.zeros((emb, LANE), jnp.bfloat16).at[:, :num_classes].set(
        params["wfc"].astype(jnp.bfloat16))
    bfc_p = jnp.zeros((1, LANE), jnp.float32).at[:, :num_classes].set(
        params["bfc"].astype(jnp.float32))

    grid_rows = n_pad // tm
    grid_k = n_pad // tk

    row_params = pltpu.CompilerParams(dimension_semantics=("parallel",),
                                      vmem_limit_bytes=VMEM_LIMIT)
    agg_params = pltpu.CompilerParams(dimension_semantics=("parallel", "arbitrary"),
                                      vmem_limit_bytes=VMEM_LIMIT)

    # --- kernel 1: t1 = dropout(X) @ W1 ---
    t1 = pl.pallas_call(
        transform_kernel,
        out_shape=jax.ShapeDtypeStruct((n_pad, emb), jnp.bfloat16),
        grid_spec=pltpu.PrefetchScalarGridSpec(
            num_scalar_prefetch=0,
            grid=(grid_rows,),
            in_specs=[pl.BlockSpec((tm, f), lambda i: (i, 0)),
                      pl.BlockSpec((f, emb), lambda i: (0, 0))],
            out_specs=pl.BlockSpec((tm, emb), lambda i: (i, 0))),
        compiler_params=row_params,
        cost_estimate=pl.CostEstimate(
            flops=2 * n_pad * f * emb, transcendentals=0,
            bytes_accessed=n_pad * f * 2 + f * emb * 2 + n_pad * emb * 2),
    )(x_p, w1)

    # --- kernel 2 (GCNConv #1 + fused W2): t2 = relu(Â @ t1 + b1) @ W2 ---
    t2 = pl.pallas_call(
        functools.partial(aggregate_w2_kernel, tk=tk),
        out_shape=jax.ShapeDtypeStruct((n_pad, emb), jnp.bfloat16),
        grid_spec=pltpu.PrefetchScalarGridSpec(
            num_scalar_prefetch=0,
            grid=(grid_rows, grid_k),
            in_specs=[pl.BlockSpec((tm, tk), lambda i, k: (i, k)),
                      pl.BlockSpec((n_pad, emb), lambda i, k: (0, 0)),  # resident H
                      pl.BlockSpec((1, emb), lambda i, k: (0, 0)),
                      pl.BlockSpec((emb, emb), lambda i, k: (0, 0))],
            out_specs=pl.BlockSpec((tm, emb), lambda i, k: (i, 0)),
            scratch_shapes=[pltpu.VMEM((tm, emb), jnp.float32)]),
        compiler_params=agg_params,
        cost_estimate=pl.CostEstimate(
            flops=2 * n_pad * n_pad * emb + 2 * n_pad * emb * emb,
            transcendentals=0,
            bytes_accessed=(n_pad * n_pad * 2 + n_pad * emb * 2
                            + emb * emb * 2 + n_pad * emb * 2)),
    )(adj_p, t1, b1, w2)

    # --- kernel 3 (GCNConv #2 + fused fc+softmax) ---
    probs = pl.pallas_call(
        functools.partial(aggregate_fc_softmax_kernel, tk=tk,
                          num_classes=num_classes),
        out_shape=jax.ShapeDtypeStruct((n_pad, LANE), jnp.float32),
        grid_spec=pltpu.PrefetchScalarGridSpec(
            num_scalar_prefetch=0,
            grid=(grid_rows, grid_k),
            in_specs=[pl.BlockSpec((tm, tk), lambda i, k: (i, k)),
                      pl.BlockSpec((n_pad, emb), lambda i, k: (0, 0)),  # resident H
                      pl.BlockSpec((1, emb), lambda i, k: (0, 0)),
                      pl.BlockSpec((emb, LANE), lambda i, k: (0, 0)),
                      pl.BlockSpec((1, LANE), lambda i, k: (0, 0))],
            out_specs=pl.BlockSpec((tm, LANE), lambda i, k: (i, 0)),
            scratch_shapes=[pltpu.VMEM((tm, emb), jnp.float32)]),
        compiler_params=agg_params,
        cost_estimate=pl.CostEstimate(
            flops=2 * n_pad * n_pad * emb + 2 * n_pad * emb * LANE,
            transcendentals=n_pad * LANE,
            bytes_accessed=(n_pad * n_pad * 2 + n_pad * emb * 2
                            + emb * LANE * 2 + n_pad * LANE * 4)),
    )(adj_p, t2, b2, wfc_p, bfc_p)

    return probs[:n, :num_classes]


# --------------------------- preprocessing / init --------------------------

def build_normalized_adj(edge_index, num_nodes):
    """Dense PyG-style GCN normalization: D^-1/2 (A + I) D^-1/2, A[dst, src] = 1."""
    src, dst = edge_index[0], edge_index[1]
    a = jnp.zeros((num_nodes, num_nodes), jnp.float32)
    a = a.at[dst, src].set(1.0)
    a = a + jnp.eye(num_nodes, dtype=jnp.float32)          # self-loops
    deg = jnp.sum(a, axis=1)
    d_inv_sqrt = jnp.where(deg > 0, 1.0 / jnp.sqrt(deg), 0.0)
    return d_inv_sqrt[:, None] * a * d_inv_sqrt[None, :]


def init_params(key, num_features, embedding_size, num_classes):
    k1, k2, k3, k4 = jax.random.split(key, 4)

    def glorot(k, fan_in, fan_out):
        lim = jnp.sqrt(6.0 / (fan_in + fan_out))
        return jax.random.uniform(k, (fan_in, fan_out), jnp.float32, -lim, lim)

    lim_fc = 1.0 / jnp.sqrt(embedding_size)
    return {
        "w1": glorot(k1, num_features, embedding_size),
        "b1": jnp.zeros((1, embedding_size), jnp.float32),
        "w2": glorot(k2, embedding_size, embedding_size),
        "b2": jnp.zeros((1, embedding_size), jnp.float32),
        "wfc": jax.random.uniform(k3, (embedding_size, num_classes),
                                  jnp.float32, -lim_fc, lim_fc),
        "bfc": jax.random.uniform(k4, (1, num_classes),
                                  jnp.float32, -lim_fc, lim_fc),
    }


def gcn_reference(x, adj_norm, params, dropout_key, *, training=True):
    """Pure-JAX f32 reference with the same dropout mask as the kernel path."""
    if training:
        keep = jax.random.bernoulli(dropout_key, 0.5, x.shape)
        xd = jnp.where(keep, x * 2.0, 0.0)
    else:
        xd = x
    h = jnp.maximum(adj_norm @ (xd @ params["w1"]) + params["b1"], 0.0)
    h = jnp.maximum(adj_norm @ (h @ params["w2"]) + params["b2"], 0.0)
    logits = h @ params["wfc"] + params["bfc"]
    return jax.nn.softmax(logits, axis=-1)


if __name__ == "__main__":
    # Small synthetic graph (stands in for WikiCS), lane-aligned dims.
    num_nodes = 256
    num_features = 128
    embedding_size = 256          # as in the PyTorch module
    num_classes = 10

    key = jax.random.PRNGKey(0)
    kx, ke, kp, kd = jax.random.split(key, 4)

    x = jax.random.normal(kx, (num_nodes, num_features), jnp.float32)
    num_edges = 1024
    edge_index = jax.random.randint(ke, (2, num_edges), 0, num_nodes, jnp.int32)

    adj_norm = build_normalized_adj(edge_index, num_nodes)
    params = init_params(kp, num_features, embedding_size, num_classes)

    out = gcn_forward(x, adj_norm, params, kd, training=True)
    jax.block_until_ready(out)

    assert out.shape == (num_nodes, num_classes)
    row_sums = jnp.sum(out, axis=-1)
    assert bool(jnp.all(jnp.abs(row_sums - 1.0) < 1e-3)), "softmax rows must sum to ~1"

    ref = gcn_reference(x, adj_norm, params, kd, training=True)
    max_err = float(jnp.max(jnp.abs(out - ref)))
    assert max_err < 5e-2, f"kernel deviates from f32 reference: {max_err}"

    print("KERNEL_OK")
</pallas_src>

<mosaic_0001>
module attributes {stable_mosaic.version = 11 : i64} {
  func.func @transform_kernel(%arg0: i32, %arg1: memref<256x128xbf16, #tpu.memory_space<vmem>>, %arg2: memref<128x256xbf16, #tpu.memory_space<vmem>>, %arg3: memref<256x256xbf16, #tpu.memory_space<vmem>>) attributes {dimension_semantics = [#tpu.dimension_semantics<parallel>], iteration_bounds = array<i64: 1>, scalar_prefetch = 0 : i64, scratch_operands = 0 : i64, tpu.core_type = #tpu.core_type<tc>, window_params = [{transform_indices = @transform_0, window_bounds = array<i64: 256, 128>}, {pipeline_mode = #tpu.pipeline_mode<synchronous>, transform_indices = @transform_1, window_bounds = array<i64: 128, 256>}, {transform_indices = @transform_2, window_bounds = array<i64: 256, 256>}]} {
    %c0 = arith.constant 0 : index
    %c0_0 = arith.constant 0 : index
    %0 = vector.load %arg1[%c0, %c0_0] : memref<256x128xbf16, #tpu.memory_space<vmem>>, vector<256x128xbf16>
    %c0_1 = arith.constant 0 : index
    %c0_2 = arith.constant 0 : index
    %1 = vector.load %arg2[%c0_1, %c0_2] : memref<128x256xbf16, #tpu.memory_space<vmem>>, vector<128x256xbf16>
    %cst = arith.constant dense<0.000000e+00> : vector<256x256xf32>
    %2 = tpu.matmul %0, %1, %cst {dimension_numbers = #tpu.dot_dimension_numbers<[1], [0], [0], [1], [0, 0, 1, 1], [], []>} : vector<256x128xbf16>, vector<128x256xbf16>, vector<256x256xf32> -> vector<256x256xf32>
    %3 = arith.truncf %2 : vector<256x256xf32> to vector<256x256xbf16>
    %c0_3 = arith.constant 0 : index
    %c0_4 = arith.constant 0 : index
    %4 = vector.load %arg3[%c0_3, %c0_4] : memref<256x256xbf16, #tpu.memory_space<vmem>>, vector<256x256xbf16>
    tpu.vector_store %arg3[%c0_3, %c0_4], %3 {strides = array<i32>} : memref<256x256xbf16, #tpu.memory_space<vmem>>, vector<256x256xbf16>,
    return
  }
  func.func @transform_0(%arg0: i32) -> (i32, i32) {
    %c0_i32 = arith.constant 0 : i32
    %c0_i32_0 = arith.constant 0 : i32
    return %arg0, %c0_i32 : i32, i32
  }
  func.func @transform_1(%arg0: i32) -> (i32, i32) {
    %c0_i32 = arith.constant 0 : i32
    %c0_i32_0 = arith.constant 0 : i32
    %c0_i32_1 = arith.constant 0 : i32
    return %c0_i32, %c0_i32_0 : i32, i32
  }
  func.func @transform_2(%arg0: i32) -> (i32, i32) {
    %c0_i32 = arith.constant 0 : i32
    %c0_i32_0 = arith.constant 0 : i32
    return %arg0, %c0_i32 : i32, i32
  }
}

</mosaic_0001>

<bundles_post_ra>
// kernel: tpu_custom_call.1
= control target key start
LH: loop header
LB: loop body
LE: loop exit
PB: predicated region body
PF: predicated region fallthrough
CT: control target
= control target key end

     0   :  { %7 = vsyncpa [#allocation3], 0  ;;  %s828_s0 = inlined_call_operand.hbm [shape: bf16[256,128], index: 0, kind: input, shape index: {}]   ;;  %s829_s1 = inlined_call_operand.hbm [shape: bf16[128,256], index: 1, kind: input, shape index: {}]   ;;  %s830_s2 = inlined_call_operand.hbm [shape: bf16[256,256], index: 2, kind: output, shape index: {}]  }
   0x1   :  { %8 = vsyncpa [#allocation6], 0 }
   0x2   :  { %9 = vsyncpa [#allocation4], 0  ;;  %s14_s11 = sshll.u32 %s828_s0, 4  ;;  %s791_s12 = smov [#allocation2]   ;;  %s15_s11 = int_to_ptr.hbm [resolvable:$true] %s14_s11 }
   0x3   :  { %s16_s13 = sshll.u32 %s791_s12, 4  ;;  %s27_s16 = sshll.u32 %s829_s1, 4  ;;  %s17_s13 = int_to_ptr.vmem [resolvable:$true] %s16_s13  ;;  %s28_s16 = int_to_ptr.hbm [resolvable:$true] %s27_s16 }
   0x4   :  { %s792_s17 = smov 64   ;;  %s793_s18 = smov 4  }
   0x5   :  { %22 = dma.hbm_to_vmem [thread:$0]  %s15_s11, 2048, %s17_s13, [#allocation3], %s792_s17, %s792_s17, %s793_s18  }
   0x6   :  { %s794_s19 = smov [#allocation5]   ;;  %s795_s21 = smov 128  }
   0x7   :  { %s29_s20 = sshll.u32 %s794_s19, 4  ;;  %s796_s22 = smov 8   ;;  %s30_s20 = int_to_ptr.vmem [resolvable:$true] %s29_s20 }
   0x8   :  { %35 = dma.hbm_to_vmem [thread:$0]  %s28_s16, 2048, %s30_s20, [#allocation6], %s795_s21, %s795_s21, %s796_s22  }
   0x9   :  { %785 = dma.done.wait [#allocation3], 2048  }
   0xa   :  { %786 = vsyncadd [#allocation3], 4294965248 }
   0xb   :  { %787 = dma.done.wait [#allocation6], 2048  }
   0xc   :  { %788 = vsyncadd [#allocation6], 4294965248  ;;  %v652_v0 = vld [vmem:[#allocation5 + $0x70] sm:$0xf]  ;;  %v689_v1 = vld [vmem:[#allocation5 + $0x74] sm:$0xf0] }
   0xd   :  { %v688_v2 = vld [vmem:[#allocation5 + $0x74] sm:$0xf]  ;;  %v653_v3 = vor.u32 %v689_v1, %v652_v0  ;;  %v654_v4 = vld [vmem:[#allocation5 + $0x78] sm:$0xf0]  ;;  %v644_v5 = vld [vmem:[#allocation5 + $0x60] sm:$0xf] }
   0xe   :  { %v687_v6 = vld [vmem:[#allocation5 + $0x64] sm:$0xf0]  ;;  %v657_v7 = vor.u32 %v688_v2, %v654_v4  ;;  %v686_v8 = vld [vmem:[#allocation5 + $0x64] sm:$0xf]  ;;  %v646_v9 = vld [vmem:[#allocation5 + $0x68] sm:$0xf0] }
   0xf   :  { %268 = vmatpush.bf16.msra.mxu0 %v653_v3  ;;  %690 = vmatpush.bf16.msra.mxu2 %v653_v3  ;;  %v645_v10 = vor.u32 %v687_v6, %v644_v5  ;;  %v649_v11 = vor.u32 %v686_v8, %v646_v9  ;;  %v636_v12 = vld [vmem:[#allocation5 + $0x50] sm:$0xf]  ;;  %v685_v13 = vld [vmem:[#allocation5 + $0x54] sm:$0xf0]  ;;  %v684_v14 = vld [vmem:[#allocation5 + $0x54] sm:$0xf] }
  0x10   :  { %357 = vmatpush.bf16.msra.mxu1 %v657_v7  ;;  %698 = vmatpush.bf16.msra.mxu3 %v657_v7  ;;  %v638_v15 = vld [vmem:[#allocation5 + $0x58] sm:$0xf0]  ;;  %v637_v16 = vor.u32 %v685_v13, %v636_v12  ;;  %v628_v18 = vld [vmem:[#allocation5 + $0x40] sm:$0xf]  ;;  %v683_v19 = vld [vmem:[#allocation5 + $0x44] sm:$0xf0] }
  0x11   :  { %v641_v17 = vor.u32 %v684_v14, %v638_v15  ;;  %v682_v20 = vld [vmem:[#allocation5 + $0x44] sm:$0xf]  ;;  %v630_v21 = vld [vmem:[#allocation5 + $0x48] sm:$0xf0]  ;;  %v629_v22 = vor.u32 %v683_v19, %v628_v18  ;;  %v620_v24 = vld [vmem:[#allocation5 + $0x30] sm:$0xf] }
  0x12   :  { %v633_v23 = vor.u32 %v682_v20, %v630_v21  ;;  %v681_v25 = vld [vmem:[#allocation5 + $0x34] sm:$0xf0]  ;;  %v680_v26 = vld [vmem:[#allocation5 + $0x34] sm:$0xf]  ;;  %v622_v27 = vld [vmem:[#allocation5 + $0x38] sm:$0xf0] }
  0x13   :  { %269 = vmatpush.bf16.msra.mxu0 %v645_v10  ;;  %691 = vmatpush.bf16.msra.mxu2 %v645_v10  ;;  %v621_v28 = vor.u32 %v681_v25, %v620_v24  ;;  %v625_v29 = vor.u32 %v680_v26, %v622_v27  ;;  %v612_v30 = vld [vmem:[#allocation5 + $0x20] sm:$0xf]  ;;  %v679_v31 = vld [vmem:[#allocation5 + $0x24] sm:$0xf0]  ;;  %v678_v32 = vld [vmem:[#allocation5 + $0x24] sm:$0xf] }
  0x14   :  { %358 = vmatpush.bf16.msra.mxu1 %v649_v11  ;;  %699 = vmatpush.bf16.msra.mxu3 %v649_v11  ;;  %v614_v33 = vld [vmem:[#allocation5 + $0x28] sm:$0xf0]  ;;  %v613_v34 = vor.u32 %v679_v31, %v612_v30  ;;  %v604_v36 = vld [vmem:[#allocation5 + $0x10] sm:$0xf]  ;;  %v677_v37 = vld [vmem:[#allocation5 + $0x14] sm:$0xf0] }
  0x15   :  { %v617_v35 = vor.u32 %v678_v32, %v614_v33  ;;  %v676_v38 = vld [vmem:[#allocation5 + $0x14] sm:$0xf]  ;;  %v606_v39 = vld [vmem:[#allocation5 + $0x18] sm:$0xf0]  ;;  %v605_v40 = vor.u32 %v677_v37, %v604_v36  ;;  %v596_v42 = vld [vmem:[#allocation5] sm:$0xf] }
  0x16   :  { %v609_v41 = vor.u32 %v676_v38, %v606_v39  ;;  %v675_v43 = vld [vmem:[#allocation5 + $0x4] sm:$0xf0]  ;;  %v674_v44 = vld [vmem:[#allocation5 + $0x4] sm:$0xf]  ;;  %v598_v45 = vld [vmem:[#allocation5 + $0x8] sm:$0xf0] }
  0x17   :  { %270 = vmatpush.bf16.msra.mxu0 %v637_v16  ;;  %692 = vmatpush.bf16.msra.mxu2 %v637_v16  ;;  %v597_v46 = vor.u32 %v675_v43, %v596_v42  ;;  %v601_v47 = vor.u32 %v674_v44, %v598_v45  ;;  %v658_v48 = vld [vmem:[#allocation2] sm:$0xff]  ;;  %v659_v50 = vld [vmem:[#allocation2 + $0x8] sm:$0xff]  ;;  %v660_v52 = vld [vmem:[#allocation2 + $0x10] sm:$0xff]  ;;  %s797_s0 = smov [#allocation7]   ;;  %s516_s25 = sshll.u32 %s830_s2, 4  ;;  %s517_s25 = int_to_ptr.hbm [resolvable:$true] %s516_s25 }
  0x18   :  { %359 = vmatpush.bf16.msra.mxu1 %v641_v17  ;;  %700 = vmatpush.bf16.msra.mxu3 %v641_v17  ;;  %v666_v49 = vld [vmem:[#allocation2 + $0x40] sm:$0xff]  ;;  %v667_v51 = vld [vmem:[#allocation2 + $0x48] sm:$0xff]  ;;  %v668_v53 = vld [vmem:[#allocation2 + $0x50] sm:$0xff]  ;;  %s514_s1 = sshll.u32 %s797_s0, 4  ;;  %s515_s1 = int_to_ptr.vmem [resolvable:$true] %s514_s1 }
  0x19   :  { %v661_v54 = vld [vmem:[#allocation2 + $0x18] sm:$0xff]  ;;  %v662_v56 = vld [vmem:[#allocation2 + $0x20] sm:$0xff]  ;;  %v663_v58 = vld [vmem:[#allocation2 + $0x28] sm:$0xff] }
  0x1a   :  { %v669_v55 = vld [vmem:[#allocation2 + $0x58] sm:$0xff]  ;;  %v670_v57 = vld [vmem:[#allocation2 + $0x60] sm:$0xff]  ;;  %v671_v59 = vld [vmem:[#allocation2 + $0x68] sm:$0xff] }
  0x1b   :  { %271 = vmatpush.bf16.msra.mxu0 %v629_v22  ;;  %693 = vmatpush.bf16.msra.mxu2 %v629_v22  ;;  %v664_v60 = vld [vmem:[#allocation2 + $0x30] sm:$0xff]  ;;  %v665_v62 = vld [vmem:[#allocation2 + $0x38] sm:$0xff] }
  0x1c   :  { %360 = vmatpush.bf16.msra.mxu1 %v633_v23  ;;  %701 = vmatpush.bf16.msra.mxu3 %v633_v23  ;;  %v672_v61 = vld [vmem:[#allocation2 + $0x70] sm:$0xff]  ;;  %v673_v63 = vld [vmem:[#allocation2 + $0x78] sm:$0xff] }
  0x1f   :  { %272 = vmatpush.bf16.msra.mxu0 %v621_v28  ;;  %694 = vmatpush.bf16.msra.mxu2 %v621_v28 }
  0x20   :  { %361 = vmatpush.bf16.msra.mxu1 %v625_v29  ;;  %702 = vmatpush.bf16.msra.mxu3 %v625_v29 }
  0x23   :  { %273 = vmatpush.bf16.msra.mxu0 %v613_v34  ;;  %695 = vmatpush.bf16.msra.mxu2 %v613_v34 }
  0x24   :  { %362 = vmatpush.bf16.msra.mxu1 %v617_v35  ;;  %703 = vmatpush.bf16.msra.mxu3 %v617_v35 }
  0x27   :  { %274 = vmatpush.bf16.msra.mxu0 %v605_v40  ;;  %696 = vmatpush.bf16.msra.mxu2 %v605_v40 }
  0x28   :  { %363 = vmatpush.bf16.msra.mxu1 %v609_v41  ;;  %704 = vmatpush.bf16.msra.mxu3 %v609_v41 }
  0x2b   :  { %275 = vmatpush.bf16.msra.mxu0 %v597_v46  ;;  %697 = vmatpush.bf16.msra.mxu2 %v597_v46 }
  0x2c   :  { %364 = vmatpush.bf16.msra.mxu1 %v601_v47  ;;  %705 = vmatpush.bf16.msra.mxu3 %v601_v47 }
  0x2e   :  { %276 = vmatmul.bf16.vlgmr.msra.gmra.mxu0 %v658_v48  ;;  %316 = vmatmul.bf16.vlgmr.msra.gmra.mxu2 %v666_v49 }
  0x2f   :  { %365 = vmatmul.bf16.vlgmr.msra.gmra.mxu1 %v658_v48  ;;  %405 = vmatmul.bf16.vlgmr.msra.gmra.mxu3 %v666_v49 }
  0x3e   :  { %281 = vmatmul.bf16.gmra.mxu0 %v659_v50  ;;  %321 = vmatmul.bf16.gmra.mxu2 %v667_v51 }
  0x3f   :  { %370 = vmatmul.bf16.gmra.mxu1 %v659_v50  ;;  %410 = vmatmul.bf16.gmra.mxu3 %v667_v51 }
  0x4e   :  { %286 = vmatmul.bf16.gmra.mxu0 %v660_v52  ;;  %326 = vmatmul.bf16.gmra.mxu2 %v668_v53 }
  0x4f   :  { %375 = vmatmul.bf16.gmra.mxu1 %v660_v52  ;;  %415 = vmatmul.bf16.gmra.mxu3 %v668_v53 }
  0x5e   :  { %291 = vmatmul.bf16.gmra.mxu0 %v661_v54  ;;  %331 = vmatmul.bf16.gmra.mxu2 %v669_v55 }
  0x5f   :  { %380 = vmatmul.bf16.gmra.mxu1 %v661_v54  ;;  %420 = vmatmul.bf16.gmra.mxu3 %v669_v55 }
  0x6e   :  { %296 = vmatmul.bf16.gmra.mxu0 %v662_v56  ;;  %336 = vmatmul.bf16.gmra.mxu2 %v670_v57 }
  0x6f   :  { %385 = vmatmul.bf16.gmra.mxu1 %v662_v56  ;;  %425 = vmatmul.bf16.gmra.mxu3 %v670_v57 }
  0x7e   :  { %301 = vmatmul.bf16.gmra.mxu0 %v663_v58  ;;  %341 = vmatmul.bf16.gmra.mxu2 %v671_v59 }
  0x7f   :  { %390 = vmatmul.bf16.gmra.mxu1 %v663_v58  ;;  %430 = vmatmul.bf16.gmra.mxu3 %v671_v59 }
  0x8e   :  { %306 = vmatmul.bf16.gmra.mxu0 %v664_v60  ;;  %346 = vmatmul.bf16.gmra.mxu2 %v672_v61 }
  0x8f   :  { %395 = vmatmul.bf16.gmra.mxu1 %v664_v60  ;;  %435 = vmatmul.bf16.gmra.mxu3 %v672_v61 }
  0x9e   :  { %311 = vmatmul.bf16.gmra.mxu0 %v665_v62  ;;  %351 = vmatmul.bf16.gmra.mxu2 %v673_v63 }
  0x9f   :  { %400 = vmatmul.bf16.gmra.mxu1 %v665_v62  ;;  %440 = vmatmul.bf16.gmra.mxu3 %v673_v63 }
  0xab   :  { %v277_v0 = vpop.f32.mrf.mxu0 }
  0xac   :  { %v366_v1 = vpop.f32.mrf.mxu1 }
  0xad   :  { %v446_v2 = vpack.c.bf16 %v366_v1, %v277_v0 }
  0xaf   :  { %478 = vst [vmem:[#allocation7] sm:$0xff] %v446_v2 }
  0xb1   :  { %v317_v3 = vpop.f32.mrf.mxu2 }
  0xb2   :  { %v406_v4 = vpop.f32.mrf.mxu3 }
  0xb3   :  { %v462_v5 = vpack.c.bf16 %v406_v4, %v317_v3  ;;  %v279_v6 = vpop.f32.mrf.mxu0 }
  0xb4   :  { %v368_v7 = vpop.f32.mrf.mxu1 }
  0xb5   :  { %494 = vst [vmem:[#allocation7 + $0x80] sm:$0xff] %v462_v5  ;;  %v447_v8 = vpack.c.bf16 %v368_v7, %v279_v6 }
  0xb7   :  { %479 = vst [vmem:[#allocation7 + $0x8] sm:$0xff] %v447_v8 }
  0xb9   :  { %v319_v9 = vpop.f32.mrf.mxu2 }
  0xba   :  { %v408_v10 = vpop.f32.mrf.mxu3 }
  0xbb   :  { %v463_v11 = vpack.c.bf16 %v408_v10, %v319_v9  ;;  %v282_v12 = vpop.f32.mrf.mxu0 }
  0xbc   :  { %v371_v13 = vpop.f32.mrf.mxu1 }
  0xbd   :  { %495 = vst [vmem:[#allocation7 + $0x88] sm:$0xff] %v463_v11  ;;  %v448_v14 = vpack.c.bf16 %v371_v13, %v282_v12 }
  0xbf   :  { %480 = vst [vmem:[#allocation7 + $0x10] sm:$0xff] %v448_v14 }
  0xc1   :  { %v322_v15 = vpop.f32.mrf.mxu2 }
  0xc2   :  { %v411_v16 = vpop.f32.mrf.mxu3 }
  0xc3   :  { %v464_v17 = vpack.c.bf16 %v411_v16, %v322_v15  ;;  %v284_v18 = vpop.f32.mrf.mxu0 }
  0xc4   :  { %v373_v19 = vpop.f32.mrf.mxu1 }
  0xc5   :  { %496 = vst [vmem:[#allocation7 + $0x90] sm:$0xff] %v464_v17  ;;  %v449_v20 = vpack.c.bf16 %v373_v19, %v284_v18 }
  0xc7   :  { %481 = vst [vmem:[#allocation7 + $0x18] sm:$0xff] %v449_v20 }
  0xc9   :  { %v324_v21 = vpop.f32.mrf.mxu2 }
  0xca   :  { %v413_v22 = vpop.f32.mrf.mxu3 }
  0xcb   :  { %v465_v23 = vpack.c.bf16 %v413_v22, %v324_v21  ;;  %v287_v24 = vpop.f32.mrf.mxu0 }
  0xcc   :  { %v376_v25 = vpop.f32.mrf.mxu1 }
  0xcd   :  { %497 = vst [vmem:[#allocation7 + $0x98] sm:$0xff] %v465_v23  ;;  %v450_v26 = vpack.c.bf16 %v376_v25, %v287_v24 }
  0xcf   :  { %482 = vst [vmem:[#allocation7 + $0x20] sm:$0xff] %v450_v26 }
  0xd1   :  { %v327_v27 = vpop.f32.mrf.mxu2 }
  0xd2   :  { %v416_v28 = vpop.f32.mrf.mxu3 }
  0xd3   :  { %v466_v29 = vpack.c.bf16 %v416_v28, %v327_v27  ;;  %v289_v30 = vpop.f32.mrf.mxu0 }
  0xd4   :  { %v378_v31 = vpop.f32.mrf.mxu1 }
  0xd5   :  { %498 = vst [vmem:[#allocation7 + $0xa0] sm:$0xff] %v466_v29  ;;  %v451_v32 = vpack.c.bf16 %v378_v31, %v289_v30 }
  0xd7   :  { %483 = vst [vmem:[#allocation7 + $0x28] sm:$0xff] %v451_v32 }
  0xd9   :  { %v329_v33 = vpop.f32.mrf.mxu2 }
  0xda   :  { %v418_v34 = vpop.f32.mrf.mxu3 }
  0xdb   :  { %v467_v35 = vpack.c.bf16 %v418_v34, %v329_v33  ;;  %v292_v36 = vpop.f32.mrf.mxu0 }
  0xdc   :  { %v381_v37 = vpop.f32.mrf.mxu1 }
  0xdd   :  { %499 = vst [vmem:[#allocation7 + $0xa8] sm:$0xff] %v467_v35  ;;  %v452_v38 = vpack.c.bf16 %v381_v37, %v292_v36 }
  0xdf   :  { %484 = vst [vmem:[#allocation7 + $0x30] sm:$0xff] %v452_v38 }
  0xe1   :  { %v332_v39 = vpop.f32.mrf.mxu2 }
  0xe2   :  { %v421_v40 = vpop.f32.mrf.mxu3 }
  0xe3   :  { %v468_v41 = vpack.c.bf16 %v421_v40, %v332_v39  ;;  %v294_v42 = vpop.f32.mrf.mxu0 }
  0xe4   :  { %v383_v43 = vpop.f32.mrf.mxu1 }
  0xe5   :  { %500 = vst [vmem:[#allocation7 + $0xb0] sm:$0xff] %v468_v41  ;;  %v453_v44 = vpack.c.bf16 %v383_v43, %v294_v42 }
  0xe7   :  { %485 = vst [vmem:[#allocation7 + $0x38] sm:$0xff] %v453_v44 }
  0xe9   :  { %v334_v45 = vpop.f32.mrf.mxu2 }
  0xea   :  { %v423_v46 = vpop.f32.mrf.mxu3 }
  0xeb   :  { %v469_v47 = vpack.c.bf16 %v423_v46, %v334_v45  ;;  %v297_v48 = vpop.f32.mrf.mxu0 }
  0xec   :  { %v386_v49 = vpop.f32.mrf.mxu1 }
  0xed   :  { %501 = vst [vmem:[#allocation7 + $0xb8] sm:$0xff] %v469_v47  ;;  %v454_v50 = vpack.c.bf16 %v386_v49, %v297_v48 }
  0xef   :  { %486 = vst [vmem:[#allocation7 + $0x40] sm:$0xff] %v454_v50 }
  0xf1   :  { %v337_v51 = vpop.f32.mrf.mxu2 }
  0xf2   :  { %v426_v52 = vpop.f32.mrf.mxu3 }
  0xf3   :  { %v470_v53 = vpack.c.bf16 %v426_v52, %v337_v51  ;;  %v299_v54 = vpop.f32.mrf.mxu0 }
  0xf4   :  { %v388_v55 = vpop.f32.mrf.mxu1 }
  0xf5   :  { %502 = vst [vmem:[#allocation7 + $0xc0] sm:$0xff] %v470_v53  ;;  %v455_v56 = vpack.c.bf16 %v388_v55, %v299_v54 }
  0xf7   :  { %487 = vst [vmem:[#allocation7 + $0x48] sm:$0xff] %v455_v56 }
  0xf9   :  { %v339_v57 = vpop.f32.mrf.mxu2 }
  0xfa   :  { %v428_v58 = vpop.f32.mrf.mxu3 }
  0xfb   :  { %v471_v59 = vpack.c.bf16 %v428_v58, %v339_v57  ;;  %v302_v60 = vpop.f32.mrf.mxu0 }
  0xfc   :  { %v391_v61 = vpop.f32.mrf.mxu1 }
  0xfd   :  { %503 = vst [vmem:[#allocation7 + $0xc8] sm:$0xff] %v471_v59  ;;  %v456_v62 = vpack.c.bf16 %v391_v61, %v302_v60 }
  0xff   :  { %488 = vst [vmem:[#allocation7 + $0x50] sm:$0xff] %v456_v62 }
 0x101   :  { %v342_v63 = vpop.f32.mrf.mxu2 }
 0x102   :  { %v431_v0 = vpop.f32.mrf.mxu3 }
 0x103   :  { %v472_v1 = vpack.c.bf16 %v431_v0, %v342_v63  ;;  %v304_v2 = vpop.f32.mrf.mxu0 }
 0x104   :  { %v393_v3 = vpop.f32.mrf.mxu1 }
 0x105   :  { %504 = vst [vmem:[#allocation7 + $0xd0] sm:$0xff] %v472_v1  ;;  %v457_v4 = vpack.c.bf16 %v393_v3, %v304_v2 }
 0x107   :  { %489 = vst [vmem:[#allocation7 + $0x58] sm:$0xff] %v457_v4 }
 0x109   :  { %v344_v5 = vpop.f32.mrf.mxu2 }
 0x10a   :  { %v433_v6 = vpop.f32.mrf.mxu3 }
 0x10b   :  { %v473_v7 = vpack.c.bf16 %v433_v6, %v344_v5  ;;  %v307_v8 = vpop.f32.mrf.mxu0 }
 0x10c   :  { %v396_v9 = vpop.f32.mrf.mxu1 }
 0x10d   :  { %505 = vst [vmem:[#allocation7 + $0xd8] sm:$0xff] %v473_v7  ;;  %v458_v10 = vpack.c.bf16 %v396_v9, %v307_v8 }
 0x10f   :  { %490 = vst [vmem:[#allocation7 + $0x60] sm:$0xff] %v458_v10 }
 0x111   :  { %v347_v11 = vpop.f32.mrf.mxu2 }
 0x112   :  { %v436_v12 = vpop.f32.mrf.mxu3 }
 0x113   :  { %v474_v13 = vpack.c.bf16 %v436_v12, %v347_v11  ;;  %v309_v14 = vpop.f32.mrf.mxu0 }
 0x114   :  { %v398_v15 = vpop.f32.mrf.mxu1 }
 0x115   :  { %506 = vst [vmem:[#allocation7 + $0xe0] sm:$0xff] %v474_v13  ;;  %v459_v16 = vpack.c.bf16 %v398_v15, %v309_v14 }
 0x117   :  { %491 = vst [vmem:[#allocation7 + $0x68] sm:$0xff] %v459_v16 }
 0x119   :  { %v349_v17 = vpop.f32.mrf.mxu2 }
 0x11a   :  { %v438_v18 = vpop.f32.mrf.mxu3 }
 0x11b   :  { %v475_v19 = vpack.c.bf16 %v438_v18, %v349_v17  ;;  %v312_v20 = vpop.f32.mrf.mxu0 }
 0x11c   :  { %v401_v21 = vpop.f32.mrf.mxu1 }
 0x11d   :  { %507 = vst [vmem:[#allocation7 + $0xe8] sm:$0xff] %v475_v19  ;;  %v460_v22 = vpack.c.bf16 %v401_v21, %v312_v20 }
 0x11f   :  { %492 = vst [vmem:[#allocation7 + $0x70] sm:$0xff] %v460_v22 }
 0x121   :  { %v352_v23 = vpop.f32.mrf.mxu2 }
 0x122   :  { %v441_v24 = vpop.f32.mrf.mxu3 }
 0x123   :  { %v476_v25 = vpack.c.bf16 %v441_v24, %v352_v23  ;;  %v314_v26 = vpop.f32.mrf.mxu0 }
 0x124   :  { %v403_v27 = vpop.f32.mrf.mxu1 }
 0x125   :  { %508 = vst [vmem:[#allocation7 + $0xf0] sm:$0xff] %v476_v25  ;;  %v461_v28 = vpack.c.bf16 %v403_v27, %v314_v26 }
 0x127   :  { %493 = vst [vmem:[#allocation7 + $0x78] sm:$0xff] %v461_v28 }
 0x129   :  { %v354_v29 = vpop.f32.mrf.mxu2 }
 0x12a   :  { %v443_v30 = vpop.f32.mrf.mxu3 }
 0x12b   :  { %v477_v31 = vpack.c.bf16 %v443_v30, %v354_v29 }
 0x12d   :  { %509 = vst [vmem:[#allocation7 + $0xf8] sm:$0xff] %v477_v31 }
 0x12e   :  { %522 = dma.vmem_to_hbm [thread:$0]  %s515_s1, 4096, %s517_s25, [#allocation4], %s795_s21, %s795_s21, %s796_s22  }
 0x12f   :  { %789 = dma.done.wait [#allocation4], 4096  }
 0x130   :  { %790 = vsyncadd [#allocation4], 4294963200 }
 0x131   :  { %527 = vsyncpa [#allocation3], 1 }
 0x132   :  { %528 = vsyncpa [#allocation6], 1 }
 0x133   :  { %529 = vsyncpa [#allocation4], 1 }

</bundles_post_ra>
